<compile_context>
chip_gen: v7x
topology: tpu7x:2x2x1
jax: 0.10.0
libtpu: 0.0.40
codegen_flags: <defaults>
</compile_context>

<pallas_src>
import functools

import jax
import jax.numpy as jnp
from jax.experimental import pallas as pl
from jax.experimental.pallas import tpu as pltpu


def _round_up(x, m):
    return (x + m - 1) // m * m


def _vmem_limit_bytes():
    # Generation-aware VMEM budget: ~3/4 of physical capacity
    # (128 MiB on v5e/v6e, 64 MiB per TensorCore on v7x), capped at 96 MiB.
    try:
        cap = int(pltpu.get_tpu_info().vmem_capacity_bytes)
    except Exception:
        cap = 64 * 1024 * 1024
    return min(cap * 3 // 4, 96 * 1024 * 1024)


# ------------------------------ kernels ------------------------------------


def _gcn_layer1_kernel(a_ref, x_ref, w1_ref, b1_ref, w2_ref, hw2_ref, emb_ref=None):
    """Row tile i:  emb_i = ReLU((A_i @ X) @ W1 + b1);  hw2_i = emb_i @ W2 (bf16)."""
    # a_ref : (tm, Np) bf16     x_ref : (Np, Fp) bf16
    # w1_ref: (Fp, Hp) bf16     b1_ref: (1, Hp)  f32
    # w2_ref: (Hp, Cp) bf16
    ax = jnp.dot(a_ref[...], x_ref[...], preferred_element_type=jnp.float32)      # (tm, Fp)
    h1 = jnp.dot(ax.astype(jnp.bfloat16), w1_ref[...],
                 preferred_element_type=jnp.float32)                               # (tm, Hp)
    h1 = jnp.maximum(h1 + b1_ref[...], 0.0)                                        # ReLU (f32)
    if emb_ref is not None:
        emb_ref[...] = h1.astype(emb_ref.dtype)                                    # bf16 writeback
    hw2_ref[...] = jnp.dot(h1.astype(jnp.bfloat16), w2_ref[...],
                           preferred_element_type=jnp.float32).astype(hw2_ref.dtype)


def _gcn_layer2_kernel(a_ref, hw2_ref, b2_ref, out_ref):
    """Row tile i:  out_i = ReLU(A_i @ hw2 + b2)."""
    # a_ref: (tm, Np) bf16   hw2_ref: (Np, Cp) bf16   b2_ref: (1, Cp) f32
    out = jnp.dot(a_ref[...], hw2_ref[...], preferred_element_type=jnp.float32)
    out_ref[...] = jnp.maximum(out + b2_ref[...], 0.0).astype(out_ref.dtype)


# ------------------------------ forward ------------------------------------


@functools.partial(jax.jit, static_argnames=("return_emb",))
def gcn_forward(a_hat, in_feat, params, return_emb=False):
    """Two-layer GCN forward (dropout in eval mode == identity)."""
    n, f = in_feat.shape
    h = params["w1"].shape[1]
    c = params["w2"].shape[1]

    npad = _round_up(n, 128)
    fpad = _round_up(f, 128)
    hpad = _round_up(h, 128)
    cpad = _round_up(c, 128)

    # Zero-padding is exact: padded rows/cols contribute nothing and are sliced off.
    # (Under jit these pads fuse with the surrounding casts / the pallas custom calls.
    #  In a long-lived module, additionally hoist the padded A / W1 / W2 / b1 / b2 out
    #  of the per-call path since graph and weights are fixed across forwards.)
    a_p = jnp.pad(a_hat.astype(jnp.bfloat16), ((0, npad - n), (0, npad - n)))
    x_p = jnp.pad(in_feat.astype(jnp.bfloat16), ((0, npad - n), (0, fpad - f)))
    w1_p = jnp.pad(params["w1"].astype(jnp.bfloat16), ((0, fpad - f), (0, hpad - h)))
    b1_p = jnp.pad(params["b1"].astype(jnp.float32).reshape(1, h), ((0, 0), (0, hpad - h)))
    w2_p = jnp.pad(params["w2"].astype(jnp.bfloat16), ((0, hpad - h), (0, cpad - c)))
    b2_p = jnp.pad(params["b2"].astype(jnp.float32).reshape(1, c), ((0, 0), (0, cpad - c)))

    # 256-row tiles when Np allows (v6e/v7x 256-wide MXU); 128 fits v5e exactly.
    tm = 256 if npad % 256 == 0 else 128
    n_tiles = npad // tm

    cparams = pltpu.CompilerParams(
        dimension_semantics=("parallel",),        # v7x: 2 TensorCores split row tiles
        vmem_limit_bytes=_vmem_limit_bytes(),
    )

    # ----------------------------- phase 1 ---------------------------------
    l1_in_specs = [
        pl.BlockSpec((tm, npad), lambda i: (i, 0)),      # A row tile (pipelined)
        pl.BlockSpec((npad, fpad), lambda i: (0, 0)),    # X  (resident, fetched once)
        pl.BlockSpec((fpad, hpad), lambda i: (0, 0)),    # W1
        pl.BlockSpec((1, hpad), lambda i: (0, 0)),       # b1
        pl.BlockSpec((hpad, cpad), lambda i: (0, 0)),    # W2
    ]
    l1_flops = 2 * npad * npad * fpad + 2 * npad * fpad * hpad + 2 * npad * hpad * cpad
    l1_bytes = (2 * (npad * npad + npad * fpad + fpad * hpad + hpad * cpad
                     + npad * cpad + (npad * hpad if return_emb else 0)) + 4 * hpad)
    l1_cost = pl.CostEstimate(flops=l1_flops, transcendentals=0, bytes_accessed=l1_bytes)

    if return_emb:
        hw2_p, emb_p = pl.pallas_call(
            _gcn_layer1_kernel,
            grid=(n_tiles,),
            out_shape=(jax.ShapeDtypeStruct((npad, cpad), jnp.bfloat16),
                       jax.ShapeDtypeStruct((npad, hpad), jnp.bfloat16)),
            in_specs=l1_in_specs,
            out_specs=(pl.BlockSpec((tm, cpad), lambda i: (i, 0)),
                       pl.BlockSpec((tm, hpad), lambda i: (i, 0))),
            compiler_params=cparams,
            cost_estimate=l1_cost,
        )(a_p, x_p, w1_p, b1_p, w2_p)
    else:
        hw2_p = pl.pallas_call(
            _gcn_layer1_kernel,
            grid=(n_tiles,),
            out_shape=jax.ShapeDtypeStruct((npad, cpad), jnp.bfloat16),
            in_specs=l1_in_specs,
            out_specs=pl.BlockSpec((tm, cpad), lambda i: (i, 0)),
            compiler_params=cparams,
            cost_estimate=l1_cost,
        )(a_p, x_p, w1_p, b1_p, w2_p)
        emb_p = None

    # ----------------------------- phase 2 ---------------------------------
    l2_flops = 2 * npad * npad * cpad
    l2_bytes = 2 * (npad * npad + npad * cpad) + 4 * (cpad + npad * cpad)
    out_p = pl.pallas_call(
        _gcn_layer2_kernel,
        grid=(n_tiles,),
        out_shape=jax.ShapeDtypeStruct((npad, cpad), jnp.float32),
        in_specs=[
            pl.BlockSpec((tm, npad), lambda i: (i, 0)),    # A row tile (pipelined)
            pl.BlockSpec((npad, cpad), lambda i: (0, 0)),  # hw2 (resident)
            pl.BlockSpec((1, cpad), lambda i: (0, 0)),     # b2
        ],
        out_specs=pl.BlockSpec((tm, cpad), lambda i: (i, 0)),
        compiler_params=cparams,
        cost_estimate=pl.CostEstimate(flops=l2_flops, transcendentals=0,
                                      bytes_accessed=l2_bytes),
    )(a_p, hw2_p, b2_p)

    out = out_p[:n, :c]
    if return_emb:
        return out, emb_p[:n, :h].astype(jnp.float32)
    return out


# ------------------------------ test harness --------------------------------


def xavier_uniform(key, shape):
    fan_in, fan_out = shape
    limit = jnp.sqrt(6.0 / (fan_in + fan_out))
    return jax.random.uniform(key, shape, jnp.float32, -limit, limit)


def build_normalized_adjacency(key, n):
    # deterministic random undirected graph + self loops, symmetric normalization
    # D^{-1/2}(A+I)D^{-1/2} (self loops keep every degree > 0)
    a = (jax.random.uniform(key, (n, n)) < 0.3).astype(jnp.float32)
    a = jnp.maximum(a, a.T)                              # symmetrize
    a = jnp.maximum(a, jnp.eye(n, dtype=jnp.float32))    # add self loops
    deg = jnp.sum(a, axis=1)
    d_inv_sqrt = 1.0 / jnp.sqrt(deg)
    return d_inv_sqrt[:, None] * a * d_inv_sqrt[None, :]


if __name__ == "__main__":
    N = 64            # number of graph nodes
    in_feats = 16
    h_feats = 32
    num_classes = 8

    key = jax.random.PRNGKey(0)
    k_adj, k_feat, k_w1, k_w2 = jax.random.split(key, 4)

    a_hat = build_normalized_adjacency(k_adj, N)
    in_feat = jax.random.normal(k_feat, (N, in_feats), jnp.float32)

    params = {
        "w1": xavier_uniform(k_w1, (in_feats, h_feats)),
        "b1": jnp.zeros((1, h_feats), jnp.float32),
        "w2": xavier_uniform(k_w2, (h_feats, num_classes)),
        "b2": jnp.zeros((1, num_classes), jnp.float32),
    }

    out, emb = gcn_forward(a_hat, in_feat, params, return_emb=True)
    out_only = gcn_forward(a_hat, in_feat, params, return_emb=False)
    jax.block_until_ready((out, emb, out_only))

    # plain-JAX f32 reference (checks fusion, tiling, reassociation, padding)
    h_ref = jnp.maximum(a_hat @ in_feat @ params["w1"] + params["b1"], 0.0)
    o_ref = jnp.maximum(a_hat @ h_ref @ params["w2"] + params["b2"], 0.0)

    assert out.shape == (N, num_classes) and emb.shape == (N, h_feats)
    assert jnp.allclose(emb, h_ref, rtol=5e-2, atol=5e-2)
    assert jnp.allclose(out, o_ref, rtol=5e-2, atol=5e-2)
    assert jnp.allclose(out_only, out, rtol=1e-6, atol=1e-6)
    print("KERNEL_OK")
</pallas_src>

<mosaic_0001>
module attributes {stable_mosaic.version = 11 : i64} {
  func.func @_gcn_layer2_kernel(%arg0: i32, %arg1: memref<128x128xbf16, #tpu.memory_space<vmem>>, %arg2: memref<128x128xbf16, #tpu.memory_space<vmem>>, %arg3: memref<1x128xf32, #tpu.memory_space<vmem>>, %arg4: memref<128x128xf32, #tpu.memory_space<vmem>>) attributes {dimension_semantics = [#tpu.dimension_semantics<parallel>], iteration_bounds = array<i64: 1>, scalar_prefetch = 0 : i64, scratch_operands = 0 : i64, tpu.core_type = #tpu.core_type<tc>, window_params = [{transform_indices = @transform_0, window_bounds = array<i64: 128, 128>}, {pipeline_mode = #tpu.pipeline_mode<synchronous>, transform_indices = @transform_1, window_bounds = array<i64: 128, 128>}, {pipeline_mode = #tpu.pipeline_mode<synchronous>, transform_indices = @transform_2, window_bounds = array<i64: 1, 128>}, {transform_indices = @transform_3, window_bounds = array<i64: 128, 128>}]} {
    %c0 = arith.constant 0 : index
    %c0_0 = arith.constant 0 : index
    %0 = vector.load %arg1[%c0, %c0_0] : memref<128x128xbf16, #tpu.memory_space<vmem>>, vector<128x128xbf16>
    %c0_1 = arith.constant 0 : index
    %c0_2 = arith.constant 0 : index
    %1 = vector.load %arg2[%c0_1, %c0_2] : memref<128x128xbf16, #tpu.memory_space<vmem>>, vector<128x128xbf16>
    %cst = arith.constant dense<0.000000e+00> : vector<128x128xf32>
    %2 = tpu.matmul %0, %1, %cst {dimension_numbers = #tpu.dot_dimension_numbers<[1], [0], [0], [1], [0, 0, 1, 1], [], []>} : vector<128x128xbf16>, vector<128x128xbf16>, vector<128x128xf32> -> vector<128x128xf32>
    %c0_3 = arith.constant 0 : index
    %c0_4 = arith.constant 0 : index
    %3 = vector.load %arg3[%c0_3, %c0_4] : memref<1x128xf32, #tpu.memory_space<vmem>>, vector<1x128xf32>
    %4 = vector.broadcast %3 : vector<1x128xf32> to vector<128x128xf32>
    %5 = arith.addf %2, %4 : vector<128x128xf32>
    %cst_5 = arith.constant 0.000000e+00 : f32
    %6 = vector.broadcast %cst_5 : f32 to vector<128x128xf32>
    %7 = arith.maximumf %5, %6 : vector<128x128xf32>
    %c0_6 = arith.constant 0 : index
    %c0_7 = arith.constant 0 : index
    %8 = vector.load %arg4[%c0_6, %c0_7] : memref<128x128xf32, #tpu.memory_space<vmem>>, vector<128x128xf32>
    tpu.vector_store %arg4[%c0_6, %c0_7], %7 {strides = array<i32>} : memref<128x128xf32, #tpu.memory_space<vmem>>, vector<128x128xf32>,
    return
  }
  func.func @transform_0(%arg0: i32) -> (i32, i32) {
    %c0_i32 = arith.constant 0 : i32
    %c0_i32_0 = arith.constant 0 : i32
    return %arg0, %c0_i32 : i32, i32
  }
  func.func @transform_1(%arg0: i32) -> (i32, i32) {
    %c0_i32 = arith.constant 0 : i32
    %c0_i32_0 = arith.constant 0 : i32
    %c0_i32_1 = arith.constant 0 : i32
    return %c0_i32, %c0_i32_0 : i32, i32
  }
  func.func @transform_2(%arg0: i32) -> (i32, i32) {
    %c0_i32 = arith.constant 0 : i32
    %c0_i32_0 = arith.constant 0 : i32
    %c0_i32_1 = arith.constant 0 : i32
    return %c0_i32, %c0_i32_0 : i32, i32
  }
  func.func @transform_3(%arg0: i32) -> (i32, i32) {
    %c0_i32 = arith.constant 0 : i32
    %c0_i32_0 = arith.constant 0 : i32
    return %arg0, %c0_i32 : i32, i32
  }
}

module attributes {stable_mosaic.version = 11 : i64} {
  func.func @_gcn_layer1_kernel(%arg0: i32, %arg1: memref<128x128xbf16, #tpu.memory_space<vmem>>, %arg2: memref<128x128xbf16, #tpu.memory_space<vmem>>, %arg3: memref<128x128xbf16, #tpu.memory_space<vmem>>, %arg4: memref<1x128xf32, #tpu.memory_space<vmem>>, %arg5: memref<128x128xbf16, #tpu.memory_space<vmem>>, %arg6: memref<128x128xbf16, #tpu.memory_space<vmem>>, %arg7: memref<128x128xbf16, #tpu.memory_space<vmem>>) attributes {dimension_semantics = [#tpu.dimension_semantics<parallel>], iteration_bounds = array<i64: 1>, scalar_prefetch = 0 : i64, scratch_operands = 0 : i64, tpu.core_type = #tpu.core_type<tc>, window_params = [{transform_indices = @transform_0, window_bounds = array<i64: 128, 128>}, {pipeline_mode = #tpu.pipeline_mode<synchronous>, transform_indices = @transform_1, window_bounds = array<i64: 128, 128>}, {pipeline_mode = #tpu.pipeline_mode<synchronous>, transform_indices = @transform_2, window_bounds = array<i64: 128, 128>}, {pipeline_mode = #tpu.pipeline_mode<synchronous>, transform_indices = @transform_3, window_bounds = array<i64: 1, 128>}, {pipeline_mode = #tpu.pipeline_mode<synchronous>, transform_indices = @transform_4, window_bounds = array<i64: 128, 128>}, {transform_indices = @transform_5, window_bounds = array<i64: 128, 128>}, {transform_indices = @transform_6, window_bounds = array<i64: 128, 128>}]} {
    %c0 = arith.constant 0 : index
    %c0_0 = arith.constant 0 : index
    %0 = vector.load %arg1[%c0, %c0_0] : memref<128x128xbf16, #tpu.memory_space<vmem>>, vector<128x128xbf16>
    %c0_1 = arith.constant 0 : index
    %c0_2 = arith.constant 0 : index
    %1 = vector.load %arg2[%c0_1, %c0_2] : memref<128x128xbf16, #tpu.memory_space<vmem>>, vector<128x128xbf16>
    %cst = arith.constant dense<0.000000e+00> : vector<128x128xf32>
    %2 = tpu.matmul %0, %1, %cst {dimension_numbers = #tpu.dot_dimension_numbers<[1], [0], [0], [1], [0, 0, 1, 1], [], []>} : vector<128x128xbf16>, vector<128x128xbf16>, vector<128x128xf32> -> vector<128x128xf32>
    %3 = arith.truncf %2 : vector<128x128xf32> to vector<128x128xbf16>
    %c0_3 = arith.constant 0 : index
    %c0_4 = arith.constant 0 : index
    %4 = vector.load %arg3[%c0_3, %c0_4] : memref<128x128xbf16, #tpu.memory_space<vmem>>, vector<128x128xbf16>
    %cst_5 = arith.constant dense<0.000000e+00> : vector<128x128xf32>
    %5 = tpu.matmul %3, %4, %cst_5 {dimension_numbers = #tpu.dot_dimension_numbers<[1], [0], [0], [1], [0, 0, 1, 1], [], []>} : vector<128x128xbf16>, vector<128x128xbf16>, vector<128x128xf32> -> vector<128x128xf32>
    %c0_6 = arith.constant 0 : index
    %c0_7 = arith.constant 0 : index
    %6 = vector.load %arg4[%c0_6, %c0_7] : memref<1x128xf32, #tpu.memory_space<vmem>>, vector<1x128xf32>
    %7 = vector.broadcast %6 : vector<1x128xf32> to vector<128x128xf32>
    %8 = arith.addf %5, %7 : vector<128x128xf32>
    %cst_8 = arith.constant 0.000000e+00 : f32
    %9 = vector.broadcast %cst_8 : f32 to vector<128x128xf32>
    %10 = arith.maximumf %8, %9 : vector<128x128xf32>
    %11 = arith.truncf %10 : vector<128x128xf32> to vector<128x128xbf16>
    %c0_9 = arith.constant 0 : index
    %c0_10 = arith.constant 0 : index
    %12 = vector.load %arg7[%c0_9, %c0_10] : memref<128x128xbf16, #tpu.memory_space<vmem>>, vector<128x128xbf16>
    tpu.vector_store %arg7[%c0_9, %c0_10], %11 {strides = array<i32>} : memref<128x128xbf16, #tpu.memory_space<vmem>>, vector<128x128xbf16>,
    %13 = arith.truncf %10 : vector<128x128xf32> to vector<128x128xbf16>
    %c0_11 = arith.constant 0 : index
    %c0_12 = arith.constant 0 : index
    %14 = vector.load %arg5[%c0_11, %c0_12] : memref<128x128xbf16, #tpu.memory_space<vmem>>, vector<128x128xbf16>
    %cst_13 = arith.constant dense<0.000000e+00> : vector<128x128xf32>
    %15 = tpu.matmul %13, %14, %cst_13 {dimension_numbers = #tpu.dot_dimension_numbers<[1], [0], [0], [1], [0, 0, 1, 1], [], []>} : vector<128x128xbf16>, vector<128x128xbf16>, vector<128x128xf32> -> vector<128x128xf32>
    %16 = arith.truncf %15 : vector<128x128xf32> to vector<128x128xbf16>
    %c0_14 = arith.constant 0 : index
    %c0_15 = arith.constant 0 : index
    %17 = vector.load %arg6[%c0_14, %c0_15] : memref<128x128xbf16, #tpu.memory_space<vmem>>, vector<128x128xbf16>
    tpu.vector_store %arg6[%c0_14, %c0_15], %16 {strides = array<i32>} : memref<128x128xbf16, #tpu.memory_space<vmem>>, vector<128x128xbf16>,
    return
  }
  func.func @transform_0(%arg0: i32) -> (i32, i32) {
    %c0_i32 = arith.constant 0 : i32
    %c0_i32_0 = arith.constant 0 : i32
    return %arg0, %c0_i32 : i32, i32
  }
  func.func @transform_1(%arg0: i32) -> (i32, i32) {
    %c0_i32 = arith.constant 0 : i32
    %c0_i32_0 = arith.constant 0 : i32
    %c0_i32_1 = arith.constant 0 : i32
    return %c0_i32, %c0_i32_0 : i32, i32
  }
  func.func @transform_2(%arg0: i32) -> (i32, i32) {
    %c0_i32 = arith.constant 0 : i32
    %c0_i32_0 = arith.constant 0 : i32
    %c0_i32_1 = arith.constant 0 : i32
    return %c0_i32, %c0_i32_0 : i32, i32
  }
  func.func @transform_3(%arg0: i32) -> (i32, i32) {
    %c0_i32 = arith.constant 0 : i32
    %c0_i32_0 = arith.constant 0 : i32
    %c0_i32_1 = arith.constant 0 : i32
    return %c0_i32, %c0_i32_0 : i32, i32
  }
  func.func @transform_4(%arg0: i32) -> (i32, i32) {
    %c0_i32 = arith.constant 0 : i32
    %c0_i32_0 = arith.constant 0 : i32
    %c0_i32_1 = arith.constant 0 : i32
    return %c0_i32, %c0_i32_0 : i32, i32
  }
  func.func @transform_5(%arg0: i32) -> (i32, i32) {
    %c0_i32 = arith.constant 0 : i32
    %c0_i32_0 = arith.constant 0 : i32
    return %arg0, %c0_i32 : i32, i32
  }
  func.func @transform_6(%arg0: i32) -> (i32, i32) {
    %c0_i32 = arith.constant 0 : i32
    %c0_i32_0 = arith.constant 0 : i32
    return %arg0, %c0_i32 : i32, i32
  }
}

</mosaic_0001>

<bundles_post_ra>
// kernel: gcn_forward.3
= control target key start
LH: loop header
LB: loop body
LE: loop exit
PB: predicated region body
PF: predicated region fallthrough
CT: control target
= control target key end

     0   :  { %s499_s1 = inlined_call_operand.vmem [shape: bf16[128,128], index: 1, kind: input, shape index: {}]   ;;  %s500_s0 = inlined_call_operand.vmem [shape: bf16[128,128], index: 0, kind: input, shape index: {}]   ;;  %s501_s2 = inlined_call_operand.vmem [shape: f32[1,128], index: 2, kind: input, shape index: {}]   ;;  %s502_s3 = inlined_call_operand.vmem [shape: f32[128,128], index: 3, kind: output, shape index: {}]  }
   0x1   :  { %v364_v0 = vld [vmem:[%s499_s1] sm:$0xff]   ;;  %v365_v1 = vld [vmem:[%s499_s1 + $0x8] sm:$0xff]   ;;  %v366_v2 = vld [vmem:[%s499_s1 + $0x10] sm:$0xff]  }
   0x2   :  { %316 = vmatprep.subr.bf16.mxu0 %v364_v0  ;;  %348 = vmatprep.subr.bf16.mxu1 %v364_v0  ;;  %v367_v3 = vld [vmem:[%s499_s1 + $0x18] sm:$0xff]   ;;  %v372_v4 = vld [vmem:[%s500_s0] sm:$0xff]   ;;  %v369_v7 = vld [vmem:[%s499_s1 + $0x28] sm:$0xff]  }
   0x3   :  { %317 = vmatpush3.bf16.msra.mxu0 %v364_v0  ;;  %356 = vmatpush3.bf16.msra.mxu1 %v364_v0  ;;  %v373_v5 = vld [vmem:[%s500_s0 + $0x20] sm:$0xff]   ;;  %v370_v8 = vld [vmem:[%s499_s1 + $0x30] sm:$0xff]   ;;  %v371_v9 = vld [vmem:[%s499_s1 + $0x38] sm:$0xff]  }
   0x4   :  { %318 = vmatprep.subr.bf16.mxu0 %v365_v1  ;;  %349 = vmatprep.subr.bf16.mxu1 %v365_v1  ;;  %v368_v6 = vld [vmem:[%s499_s1 + $0x20] sm:$0xff]   ;;  %v374_v10 = vld [vmem:[%s500_s0 + $0x8] sm:$0xff]   ;;  %v376_v12 = vld [vmem:[%s500_s0 + $0x10] sm:$0xff]  }
   0x5   :  { %332 = vmatprep.mubr.bf16.mxu0 %v372_v4  ;;  %340 = vmatprep.mubr.bf16.mxu1 %v373_v5  ;;  %v375_v11 = vld [vmem:[%s500_s0 + $0x28] sm:$0xff]   ;;  %v377_v13 = vld [vmem:[%s500_s0 + $0x30] sm:$0xff]   ;;  %v378_v14 = vld [vmem:[%s500_s0 + $0x18] sm:$0xff]  }
   0x6   :  { %v379_v15 = vld [vmem:[%s500_s0 + $0x38] sm:$0xff]   ;;  %v283_v16 = vld [vmem:[%s501_s2] ss:$0 sm:$0xff] }
   0x7   :  { %319 = vmatpush3.bf16.msra.mxu0 %v365_v1  ;;  %357 = vmatpush3.bf16.msra.mxu1 %v365_v1 }
   0x8   :  { %320 = vmatprep.subr.bf16.mxu0 %v366_v2  ;;  %350 = vmatprep.subr.bf16.mxu1 %v366_v2 }
   0xb   :  { %321 = vmatpush3.bf16.msra.mxu0 %v366_v2  ;;  %358 = vmatpush3.bf16.msra.mxu1 %v366_v2 }
   0xc   :  { %322 = vmatprep.subr.bf16.mxu0 %v367_v3  ;;  %351 = vmatprep.subr.bf16.mxu1 %v367_v3 }
   0xf   :  { %323 = vmatpush3.bf16.msra.mxu0 %v367_v3  ;;  %359 = vmatpush3.bf16.msra.mxu1 %v367_v3 }
  0x10   :  { %324 = vmatprep.subr.bf16.mxu0 %v368_v6  ;;  %352 = vmatprep.subr.bf16.mxu1 %v368_v6 }
  0x13   :  { %325 = vmatpush3.bf16.msra.mxu0 %v368_v6  ;;  %360 = vmatpush3.bf16.msra.mxu1 %v368_v6 }
  0x14   :  { %326 = vmatprep.subr.bf16.mxu0 %v369_v7  ;;  %353 = vmatprep.subr.bf16.mxu1 %v369_v7 }
  0x17   :  { %327 = vmatpush3.bf16.msra.mxu0 %v369_v7  ;;  %361 = vmatpush3.bf16.msra.mxu1 %v369_v7 }
  0x18   :  { %328 = vmatprep.subr.bf16.mxu0 %v370_v8  ;;  %354 = vmatprep.subr.bf16.mxu1 %v370_v8 }
  0x1b   :  { %329 = vmatpush3.bf16.msra.mxu0 %v370_v8  ;;  %362 = vmatpush3.bf16.msra.mxu1 %v370_v8 }
  0x1c   :  { %330 = vmatprep.subr.bf16.mxu0 %v371_v9  ;;  %355 = vmatprep.subr.bf16.mxu1 %v371_v9 }
  0x1f   :  { %331 = vmatpush3.bf16.msra.mxu0 %v371_v9  ;;  %363 = vmatpush3.bf16.msra.mxu1 %v371_v9 }
  0x22   :  { %333 = vmatmul.mubr.bf16.vlgmr.msra.gmra.mrb[0].mxu0 %v374_v10  ;;  %341 = vmatmul.mubr.bf16.vlgmr.msra.gmra.mrb[0].mxu1 %v375_v11 }
  0x23   :  { %336 = vmatprep.mubr.bf16.mxu0 %v376_v12  ;;  %344 = vmatprep.mubr.bf16.mxu1 %v377_v13 }
  0x2a   :  { %337 = vmatmul.mubr.bf16.gmra.mrb[4].mxu0 %v378_v14  ;;  %345 = vmatmul.mubr.bf16.gmra.mrb[4].mxu1 %v379_v15 }
  0xf5   :  { %v334_v17 = vpop.f32.mrb[0].mxu0  ;;  %v342_v18 = vpop.f32.mrb[0].mxu1 }
  0xf6   :  { %v193_v19 = vadd.f32 %v334_v17, %v283_v16  ;;  %v225_v20 = vadd.f32 %v342_v18, %v283_v16  ;;  %v184_v21 = vpop.f32.mrb[1].mxu0  ;;  %v216_v22 = vpop.f32.mrb[1].mxu1 }
  0xf7   :  { %v185_v23 = vadd.f32 %v283_v16, %v184_v21  ;;  %v217_v24 = vadd.f32 %v283_v16, %v216_v22  ;;  %v335_v25 = vpop.f32.mrb[2].mxu0  ;;  %v343_v26 = vpop.f32.mrb[2].mxu1 }
  0xf8   :  { %v249_v27 = vmax.f32 %v193_v19, 0.0  ;;  %v257_v28 = vmax.f32 %v225_v20, 0.0  ;;  %v196_v29 = vadd.f32 %v335_v25, %v283_v16  ;;  %v228_v30 = vadd.f32 %v343_v26, %v283_v16  ;;  %v187_v31 = vpop.f32.mrb[3].mxu0  ;;  %v219_v32 = vpop.f32.mrb[3].mxu1 }
  0xf9   :  { %v247_v33 = vmax.f32 %v185_v23, 0.0  ;;  %v255_v34 = vmax.f32 %v217_v24, 0.0  ;;  %v188_v35 = vadd.f32 %v283_v16, %v187_v31  ;;  %v220_v36 = vadd.f32 %v283_v16, %v219_v32 }
  0xfa   :  { %265 = vst [vmem:[%s502_s3 + $0x10] sm:$0xff] %v249_v27  ;;  %273 = vst [vmem:[%s502_s3 + $0x50] sm:$0xff] %v257_v28  ;;  %v250_v37 = vmax.f32 %v196_v29, 0.0  ;;  %v258_v38 = vmax.f32 %v228_v30, 0.0 }
  0xfb   :  { %263 = vst [vmem:[%s502_s3] sm:$0xff] %v247_v33  ;;  %271 = vst [vmem:[%s502_s3 + $0x40] sm:$0xff] %v255_v34  ;;  %v248_v39 = vmax.f32 %v188_v35, 0.0  ;;  %v256_v40 = vmax.f32 %v220_v36, 0.0 }
  0xfc   :  { %266 = vst [vmem:[%s502_s3 + $0x18] sm:$0xff] %v250_v37  ;;  %274 = vst [vmem:[%s502_s3 + $0x58] sm:$0xff] %v258_v38 }
  0xfd   :  { %264 = vst [vmem:[%s502_s3 + $0x8] sm:$0xff] %v248_v39  ;;  %272 = vst [vmem:[%s502_s3 + $0x48] sm:$0xff] %v256_v40  ;;  %v338_v41 = vpop.f32.mrb[4].mxu0  ;;  %v346_v42 = vpop.f32.mrb[4].mxu1 }
  0xfe   :  { %v209_v43 = vadd.f32 %v338_v41, %v283_v16  ;;  %v241_v44 = vadd.f32 %v346_v42, %v283_v16  ;;  %v200_v45 = vpop.f32.mrb[5].mxu0  ;;  %v232_v46 = vpop.f32.mrb[5].mxu1 }
  0xff   :  { %v201_v47 = vadd.f32 %v283_v16, %v200_v45  ;;  %v233_v48 = vadd.f32 %v283_v16, %v232_v46  ;;  %v339_v49 = vpop.f32.mrb[6].mxu0  ;;  %v347_v50 = vpop.f32.mrb[6].mxu1 }
 0x100   :  { %v253_v51 = vmax.f32 %v209_v43, 0.0  ;;  %v261_v52 = vmax.f32 %v241_v44, 0.0  ;;  %v212_v53 = vadd.f32 %v339_v49, %v283_v16  ;;  %v244_v54 = vadd.f32 %v347_v50, %v283_v16  ;;  %v203_v55 = vpop.f32.mrb[7].mxu0  ;;  %v235_v56 = vpop.f32.mrb[7].mxu1 }
 0x101   :  { %v251_v57 = vmax.f32 %v201_v47, 0.0  ;;  %v259_v58 = vmax.f32 %v233_v48, 0.0  ;;  %v204_v59 = vadd.f32 %v283_v16, %v203_v55  ;;  %v236_v60 = vadd.f32 %v283_v16, %v235_v56 }
 0x102   :  { %269 = vst [vmem:[%s502_s3 + $0x30] sm:$0xff] %v253_v51  ;;  %277 = vst [vmem:[%s502_s3 + $0x70] sm:$0xff] %v261_v52  ;;  %v254_v61 = vmax.f32 %v212_v53, 0.0  ;;  %v262_v62 = vmax.f32 %v244_v54, 0.0 }
 0x103   :  { %267 = vst [vmem:[%s502_s3 + $0x20] sm:$0xff] %v251_v57  ;;  %275 = vst [vmem:[%s502_s3 + $0x60] sm:$0xff] %v259_v58  ;;  %v252_v63 = vmax.f32 %v204_v59, 0.0  ;;  %v260_v0 = vmax.f32 %v236_v60, 0.0 }
 0x104   :  { %270 = vst [vmem:[%s502_s3 + $0x38] sm:$0xff] %v254_v61  ;;  %278 = vst [vmem:[%s502_s3 + $0x78] sm:$0xff] %v262_v62 }
 0x105   :  { %268 = vst [vmem:[%s502_s3 + $0x28] sm:$0xff] %v252_v63  ;;  %276 = vst [vmem:[%s502_s3 + $0x68] sm:$0xff] %v260_v0 }

// kernel: gcn_forward.2
= control target key start
LH: loop header
LB: loop body
LE: loop exit
PB: predicated region body
PF: predicated region fallthrough
CT: control target
= control target key end

     0   :  { %s1352_s1 = inlined_call_operand.vmem [shape: bf16[128,128], index: 1, kind: input, shape index: {}]   ;;  %s1353_s0 = inlined_call_operand.vmem [shape: bf16[128,128], index: 0, kind: input, shape index: {}]   ;;  %s1354_s2 = inlined_call_operand.vmem [shape: bf16[128,128], index: 2, kind: input, shape index: {}]   ;;  %s1355_s4 = inlined_call_operand.vmem [shape: bf16[128,128], index: 4, kind: input, shape index: {}]   ;;  %s1356_s3 = inlined_call_operand.vmem [shape: f32[1,128], index: 3, kind: input, shape index: {}]   ;;  %s1357_s6 = inlined_call_operand.vmem [shape: bf16[128,128], index: 6, kind: output, shape index: {1}]   ;;  %s1358_s5 = inlined_call_operand.vmem [shape: bf16[128,128], index: 5, kind: output, shape index: {0}]  }
   0x1   :  { %v1120_v0 = vld [vmem:[%s1352_s1] sm:$0xff]   ;;  %v1121_v1 = vld [vmem:[%s1352_s1 + $0x8] sm:$0xff]   ;;  %v1122_v2 = vld [vmem:[%s1352_s1 + $0x10] sm:$0xff]  }
   0x2   :  { %1008 = vmatprep.subr.bf16.mxu0 %v1120_v0  ;;  %v1123_v3 = vld [vmem:[%s1352_s1 + $0x18] sm:$0xff]   ;;  %v1128_v4 = vld [vmem:[%s1353_s0] sm:$0xff]   ;;  %v1125_v6 = vld [vmem:[%s1352_s1 + $0x28] sm:$0xff]  }
   0x3   :  { %1009 = vmatpush3.bf16.msra.mxu0 %v1120_v0  ;;  %1024 = vmatprep.mubr.bf16.mxu0 %v1128_v4  ;;  %v1124_v5 = vld [vmem:[%s1352_s1 + $0x20] sm:$0xff]   ;;  %v1137_v8 = vld [vmem:[%s1354_s2 + $0x8] sm:$0xff]   ;;  %v1126_v9 = vld [vmem:[%s1352_s1 + $0x30] sm:$0xff]  }
   0x4   :  { %1010 = vmatprep.subr.bf16.mxu0 %v1121_v1  ;;  %v1136_v7 = vld [vmem:[%s1354_s2] sm:$0xff]   ;;  %v1138_v10 = vld [vmem:[%s1354_s2 + $0x10] sm:$0xff]   ;;  %v1127_v11 = vld [vmem:[%s1352_s1 + $0x38] sm:$0xff]  }
   0x5   :  { %1040 = vmatprep.subr.bf16.mxu1 %v1136_v7  ;;  %v1139_v12 = vld [vmem:[%s1354_s2 + $0x18] sm:$0xff]   ;;  %v1140_v13 = vld [vmem:[%s1354_s2 + $0x20] sm:$0xff]   ;;  %v1129_v14 = vld [vmem:[%s1353_s0 + $0x8] sm:$0xff]  }
   0x6   :  { %1041 = vmatpush3.bf16.msra.mxu1 %v1136_v7  ;;  %v1130_v15 = vld [vmem:[%s1353_s0 + $0x10] sm:$0xff]   ;;  %v1141_v16 = vld [vmem:[%s1354_s2 + $0x28] sm:$0xff]   ;;  %v1131_v18 = vld [vmem:[%s1353_s0 + $0x18] sm:$0xff]  }
   0x7   :  { %1011 = vmatpush3.bf16.msra.mxu0 %v1121_v1  ;;  %1042 = vmatprep.subr.bf16.mxu1 %v1137_v8  ;;  %v1142_v17 = vld [vmem:[%s1354_s2 + $0x30] sm:$0xff]   ;;  %v1132_v19 = vld [vmem:[%s1353_s0 + $0x20] sm:$0xff]   ;;  %v1133_v20 = vld [vmem:[%s1353_s0 + $0x28] sm:$0xff]  }
   0x8   :  { %1012 = vmatprep.subr.bf16.mxu0 %v1122_v2  ;;  %v1134_v21 = vld [vmem:[%s1353_s0 + $0x30] sm:$0xff]   ;;  %v1135_v22 = vld [vmem:[%s1353_s0 + $0x38] sm:$0xff]   ;;  %v1144_v24 = vld [vmem:[%s1355_s4] sm:$0xff]  }
   0x9   :  { %v1143_v23 = vld [vmem:[%s1354_s2 + $0x38] sm:$0xff]   ;;  %v1145_v25 = vld [vmem:[%s1355_s4 + $0x8] sm:$0xff]   ;;  %v1146_v26 = vld [vmem:[%s1355_s4 + $0x10] sm:$0xff]  }
   0xa   :  { %1043 = vmatpush3.bf16.msra.mxu1 %v1137_v8  ;;  %v1147_v27 = vld [vmem:[%s1355_s4 + $0x18] sm:$0xff]   ;;  %v1148_v28 = vld [vmem:[%s1355_s4 + $0x20] sm:$0xff]   ;;  %v1149_v29 = vld [vmem:[%s1355_s4 + $0x28] sm:$0xff]  }
   0xb   :  { %1013 = vmatpush3.bf16.msra.mxu0 %v1122_v2  ;;  %1044 = vmatprep.subr.bf16.mxu1 %v1138_v10  ;;  %v1150_v54 = vld [vmem:[%s1355_s4 + $0x30] sm:$0xff]   ;;  %v1151_v55 = vld [vmem:[%s1355_s4 + $0x38] sm:$0xff]   ;;  %v1286_v56 = vld [vmem:[%s1356_s3] ss:$0 sm:$0xff] }
   0xc   :  { %1014 = vmatprep.subr.bf16.mxu0 %v1123_v3 }
   0xe   :  { %1045 = vmatpush3.bf16.msra.mxu1 %v1138_v10 }
   0xf   :  { %1015 = vmatpush3.bf16.msra.mxu0 %v1123_v3  ;;  %1046 = vmatprep.subr.bf16.mxu1 %v1139_v12 }
  0x10   :  { %1016 = vmatprep.subr.bf16.mxu0 %v1124_v5 }
  0x12   :  { %1047 = vmatpush3.bf16.msra.mxu1 %v1139_v12 }
  0x13   :  { %1017 = vmatpush3.bf16.msra.mxu0 %v1124_v5  ;;  %1048 = vmatprep.subr.bf16.mxu1 %v1140_v13 }
  0x14   :  { %1018 = vmatprep.subr.bf16.mxu0 %v1125_v6 }
  0x16   :  { %1049 = vmatpush3.bf16.msra.mxu1 %v1140_v13 }
  0x17   :  { %1019 = vmatpush3.bf16.msra.mxu0 %v1125_v6  ;;  %1050 = vmatprep.subr.bf16.mxu1 %v1141_v16 }
  0x18   :  { %1020 = vmatprep.subr.bf16.mxu0 %v1126_v9 }
  0x1a   :  { %1051 = vmatpush3.bf16.msra.mxu1 %v1141_v16 }
  0x1b   :  { %1021 = vmatpush3.bf16.msra.mxu0 %v1126_v9  ;;  %1052 = vmatprep.subr.bf16.mxu1 %v1142_v17 }
  0x1c   :  { %1022 = vmatprep.subr.bf16.mxu0 %v1127_v11 }
  0x1e   :  { %1053 = vmatpush3.bf16.msra.mxu1 %v1142_v17 }
  0x1f   :  { %1023 = vmatpush3.bf16.msra.mxu0 %v1127_v11  ;;  %1054 = vmatprep.subr.bf16.mxu1 %v1143_v23 }
  0x20   :  { %1072 = vmatprep.subr.bf16.mxu0 %v1144_v24 }
  0x22   :  { %1025 = vmatmul.mubr.bf16.vlgmr.msra.gmra.mrb[0].mxu0 %v1129_v14  ;;  %1055 = vmatpush3.bf16.msra.mxu1 %v1143_v23 }
  0x23   :  { %1028 = vmatprep.mubr.bf16.mxu0 %v1130_v15  ;;  %1104 = vmatprep.subr.bf16.mxu1 %v1144_v24 }
  0x24   :  { %1073 = vmatpush3.bf16.msra.mxu0 %v1144_v24 }
  0x25   :  { %1074 = vmatprep.subr.bf16.mxu0 %v1145_v25 }
  0x28   :  { %1075 = vmatpush3.bf16.msra.mxu0 %v1145_v25 }
  0x29   :  { %1076 = vmatprep.subr.bf16.mxu0 %v1146_v26 }
  0x2a   :  { %1029 = vmatmul.mubr.bf16.gmra.mrb[4].mxu0 %v1131_v18 }
  0x2b   :  { %1032 = vmatprep.mubr.bf16.mxu0 %v1132_v19 }
  0x2c   :  { %1077 = vmatpush3.bf16.msra.mxu0 %v1146_v26 }
  0x2d   :  { %1078 = vmatprep.subr.bf16.mxu0 %v1147_v27 }
  0x30   :  { %1079 = vmatpush3.bf16.msra.mxu0 %v1147_v27 }
  0x31   :  { %1080 = vmatprep.subr.bf16.mxu0 %v1148_v28 }
  0x32   :  { %1033 = vmatmul.mubr.bf16.gmra.mrb[8].mxu0 %v1133_v20 }
  0x33   :  { %1036 = vmatprep.mubr.bf16.mxu0 %v1134_v21 }
  0x34   :  { %1081 = vmatpush3.bf16.msra.mxu0 %v1148_v28 }
  0x35   :  { %1082 = vmatprep.subr.bf16.mxu0 %v1149_v29 }
  0x38   :  { %1083 = vmatpush3.bf16.msra.mxu0 %v1149_v29 }
  0x39   :  { %1084 = vmatprep.subr.bf16.mxu0 %v1150_v54 }
  0x3a   :  { %1037 = vmatmul.mubr.bf16.gmra.mrb[12].mxu0 %v1135_v22 }
  0x3c   :  { %1085 = vmatpush3.bf16.msra.mxu0 %v1150_v54 }
  0x3d   :  { %1086 = vmatprep.subr.bf16.mxu0 %v1151_v55 }
  0x40   :  { %1087 = vmatpush3.bf16.msra.mxu0 %v1151_v55 }
  0xf5   :  { %v1026_v30 = vpop.f32.mrb[0].mxu0 }
  0xf6   :  { %v185_v31 = vpop.f32.mrb[1].mxu0 }
  0xf7   :  { %v1027_v32 = vpop.f32.mrb[2].mxu0 }
  0xf8   :  { %v249_v33 = vpack.c.bf16 %v1027_v32, %v1026_v30  ;;  %v188_v34 = vpop.f32.mrb[3].mxu0 }
  0xf9   :  { %v248_v35 = vpack.c.bf16 %v188_v34, %v185_v31 }
  0xfb   :  { %1056 = vmatprep.mubr.bf16.mxu1 %v248_v35 }
  0xfc   :  { %1057 = vmatmul.mubr.bf16.vlgmr.msra.gmra.mrb[0].mxu1 %v249_v33 }
  0xfd   :  { %v1030_v36 = vpop.f32.mrb[4].mxu0  ;;  %1112 = vmatpush3.bf16.msra.mxu1 %v1144_v24 }
  0xfe   :  { %v201_v37 = vpop.f32.mrb[5].mxu0  ;;  %1105 = vmatprep.subr.bf16.mxu1 %v1145_v25 }
  0xff   :  { %v1031_v38 = vpop.f32.mrb[6].mxu0 }
 0x100   :  { %v251_v39 = vpack.c.bf16 %v1031_v38, %v1030_v36  ;;  %v204_v40 = vpop.f32.mrb[7].mxu0 }
 0x101   :  { %v250_v41 = vpack.c.bf16 %v204_v40, %v201_v37  ;;  %1113 = vmatpush3.bf16.msra.mxu1 %v1145_v25 }
 0x102   :  { %1106 = vmatprep.subr.bf16.mxu1 %v1146_v26 }
 0x103   :  { %1060 = vmatprep.mubr.bf16.mxu1 %v250_v41 }
 0x104   :  { %1061 = vmatmul.mubr.bf16.gmra.mrb[4].mxu1 %v251_v39 }
 0x105   :  { %v1034_v42 = vpop.f32.mrb[8].mxu0  ;;  %1114 = vmatpush3.bf16.msra.mxu1 %v1146_v26 }
 0x106   :  { %v217_v43 = vpop.f32.mrb[9].mxu0  ;;  %1107 = vmatprep.subr.bf16.mxu1 %v1147_v27 }
 0x107   :  { %v1035_v44 = vpop.f32.mrb[10].mxu0 }
 0x108   :  { %v253_v45 = vpack.c.bf16 %v1035_v44, %v1034_v42  ;;  %v220_v46 = vpop.f32.mrb[11].mxu0 }
 0x109   :  { %v252_v47 = vpack.c.bf16 %v220_v46, %v217_v43  ;;  %1115 = vmatpush3.bf16.msra.mxu1 %v1147_v27 }
 0x10a   :  { %1108 = vmatprep.subr.bf16.mxu1 %v1148_v28 }
 0x10b   :  { %1064 = vmatprep.mubr.bf16.mxu1 %v252_v47 }
 0x10c   :  { %1065 = vmatmul.mubr.bf16.gmra.mrb[8].mxu1 %v253_v45 }
 0x10d   :  { %v1038_v48 = vpop.f32.mrb[12].mxu0  ;;  %1116 = vmatpush3.bf16.msra.mxu1 %v1148_v28 }
 0x10e   :  { %v233_v49 = vpop.f32.mrb[13].mxu0  ;;  %1109 = vmatprep.subr.bf16.mxu1 %v1149_v29 }
 0x10f   :  { %v1039_v50 = vpop.f32.mrb[14].mxu0 }
 0x110   :  { %v255_v51 = vpack.c.bf16 %v1039_v50, %v1038_v48  ;;  %v236_v52 = vpop.f32.mrb[15].mxu0 }
 0x111   :  { %v254_v53 = vpack.c.bf16 %v236_v52, %v233_v49  ;;  %1117 = vmatpush3.bf16.msra.mxu1 %v1149_v29 }
 0x112   :  { %1110 = vmatprep.subr.bf16.mxu1 %v1150_v54 }
 0x113   :  { %1068 = vmatprep.mubr.bf16.mxu1 %v254_v53 }
 0x114   :  { %1069 = vmatmul.mubr.bf16.gmra.mrb[12].mxu1 %v255_v51 }
 0x115   :  { %1118 = vmatpush3.bf16.msra.mxu1 %v1150_v54 }
 0x116   :  { %1111 = vmatprep.subr.bf16.mxu1 %v1151_v55 }
 0x119   :  { %1119 = vmatpush3.bf16.msra.mxu1 %v1151_v55 }
 0x1cf   :  { %v1058_v57 = vpop.f32.mrb[0].mxu1 }
 0x1d0   :  { %v370_v58 = vadd.f32 %v1058_v57, %v1286_v56  ;;  %v361_v59 = vpop.f32.mrb[1].mxu1 }
 0x1d1   :  { %v362_v60 = vadd.f32 %v1286_v56, %v361_v59  ;;  %v1059_v61 = vpop.f32.mrb[2].mxu1 }
 0x1d2   :  { %v373_v62 = vadd.f32 %v1059_v61, %v1286_v56  ;;  %v364_v63 = vpop.f32.mrb[3].mxu1  ;;  %v426_v1 = vmax.f32 %v370_v58, 0.0 }
 0x1d3   :  { %v365_v0 = vadd.f32 %v1286_v56, %v364_v63  ;;  %v424_v3 = vmax.f32 %v362_v60, 0.0 }
 0x1d4   :  { %v427_v2 = vmax.f32 %v373_v62, 0.0 }
 0x1d5   :  { %v425_v4 = vmax.f32 %v365_v0, 0.0 }
 0x1d6   :  { %v441_v5 = vpack.c.bf16 %v427_v2, %v426_v1 }
 0x1d7   :  { %v440_v6 = vpack.c.bf16 %v425_v4, %v424_v3  ;;  %v1062_v7 = vpop.f32.mrb[4].mxu1 }
 0x1d8   :  { %946 = vst [vmem:[%s1357_s6 + $0x8] sm:$0xff] %v441_v5   ;;  %v386_v8 = vadd.f32 %v1062_v7, %v1286_v56  ;;  %v377_v9 = vpop.f32.mrb[5].mxu1 }
 0x1d9   :  { %870 = vst [vmem:[%s1357_s6] sm:$0xff] %v440_v6   ;;  %v378_v10 = vadd.f32 %v1286_v56, %v377_v9  ;;  %v1063_v11 = vpop.f32.mrb[6].mxu1  ;;  %1088 = vmatprep.mubr.bf16.mxu0 %v440_v6 }
 0x1da   :  { %v389_v12 = vadd.f32 %v1063_v11, %v1286_v56  ;;  %v380_v13 = vpop.f32.mrb[7].mxu1  ;;  %1089 = vmatmul.mubr.bf16.vlgmr.msra.gmra.mrb[16].mxu0 %v441_v5  ;;  %v430_v15 = vmax.f32 %v386_v8, 0.0 }
 0x1db   :  { %v381_v14 = vadd.f32 %v1286_v56, %v380_v13  ;;  %v428_v17 = vmax.f32 %v378_v10, 0.0 }
 0x1dc   :  { %v431_v16 = vmax.f32 %v389_v12, 0.0 }
 0x1dd   :  { %v429_v18 = vmax.f32 %v381_v14, 0.0 }
 0x1de   :  { %v443_v19 = vpack.c.bf16 %v431_v16, %v430_v15 }
 0x1df   :  { %v442_v20 = vpack.c.bf16 %v429_v18, %v428_v17  ;;  %v1066_v21 = vpop.f32.mrb[8].mxu1 }
 0x1e0   :  { %948 = vst [vmem:[%s1357_s6 + $0x18] sm:$0xff] %v443_v19   ;;  %v402_v22 = vadd.f32 %v1066_v21, %v1286_v56  ;;  %v393_v23 = vpop.f32.mrb[9].mxu1 }
 0x1e1   :  { %947 = vst [vmem:[%s1357_s6 + $0x10] sm:$0xff] %v442_v20   ;;  %v394_v24 = vadd.f32 %v1286_v56, %v393_v23  ;;  %v1067_v25 = vpop.f32.mrb[10].mxu1  ;;  %1092 = vmatprep.mubr.bf16.mxu0 %v442_v20 }
 0x1e2   :  { %v405_v26 = vadd.f32 %v1067_v25, %v1286_v56  ;;  %v396_v27 = vpop.f32.mrb[11].mxu1  ;;  %1093 = vmatmul.mubr.bf16.gmra.mrb[20].mxu0 %v443_v19  ;;  %v434_v29 = vmax.f32 %v402_v22, 0.0 }
 0x1e3   :  { %v397_v28 = vadd.f32 %v1286_v56, %v396_v27  ;;  %v432_v31 = vmax.f32 %v394_v24, 0.0 }
 0x1e4   :  { %v435_v30 = vmax.f32 %v405_v26, 0.0 }
 0x1e5   :  { %v433_v32 = vmax.f32 %v397_v28, 0.0 }
 0x1e6   :  { %v445_v33 = vpack.c.bf16 %v435_v30, %v434_v29 }
 0x1e7   :  { %v444_v34 = vpack.c.bf16 %v433_v32, %v432_v31  ;;  %v1070_v35 = vpop.f32.mrb[12].mxu1 }
 0x1e8   :  { %950 = vst [vmem:[%s1357_s6 + $0x28] sm:$0xff] %v445_v33   ;;  %v418_v36 = vadd.f32 %v1070_v35, %v1286_v56  ;;  %v409_v37 = vpop.f32.mrb[13].mxu1 }
 0x1e9   :  { %949 = vst [vmem:[%s1357_s6 + $0x20] sm:$0xff] %v444_v34   ;;  %v410_v38 = vadd.f32 %v1286_v56, %v409_v37  ;;  %v1071_v39 = vpop.f32.mrb[14].mxu1  ;;  %1096 = vmatprep.mubr.bf16.mxu1 %v444_v34 }
 0x1ea   :  { %v421_v40 = vadd.f32 %v1071_v39, %v1286_v56  ;;  %v412_v41 = vpop.f32.mrb[15].mxu1  ;;  %1097 = vmatmul.mubr.bf16.vlgmr.msra.gmra.mrb[16].mxu1 %v445_v33  ;;  %v438_v43 = vmax.f32 %v418_v36, 0.0 }
 0x1eb   :  { %v413_v42 = vadd.f32 %v1286_v56, %v412_v41  ;;  %v436_v45 = vmax.f32 %v410_v38, 0.0 }
 0x1ec   :  { %v439_v44 = vmax.f32 %v421_v40, 0.0 }
 0x1ed   :  { %v437_v46 = vmax.f32 %v413_v42, 0.0 }
 0x1ee   :  { %v447_v47 = vpack.c.bf16 %v439_v44, %v438_v43 }
 0x1ef   :  { %v446_v48 = vpack.c.bf16 %v437_v46, %v436_v45 }
 0x1f0   :  { %952 = vst [vmem:[%s1357_s6 + $0x38] sm:$0xff] %v447_v47  }
 0x1f1   :  { %951 = vst [vmem:[%s1357_s6 + $0x30] sm:$0xff] %v446_v48   ;;  %1100 = vmatprep.mubr.bf16.mxu1 %v446_v48 }
 0x1f2   :  { %1101 = vmatmul.mubr.bf16.gmra.mrb[20].mxu1 %v447_v47 }
 0x2ad   :  { %v1090_v49 = vpop.f32.mrb[16].mxu0 }
 0x2ae   :  { %v618_v50 = vpop.f32.mrb[17].mxu0 }
 0x2af   :  { %v1091_v51 = vpop.f32.mrb[18].mxu0 }
 0x2b0   :  { %v914_v52 = vpack.c.bf16 %v1091_v51, %v1090_v49  ;;  %v621_v53 = vpop.f32.mrb[19].mxu0 }
 0x2b1   :  { %v909_v54 = vpack.c.bf16 %v621_v53, %v618_v50 }
 0x2b2   :  { %953 = vst [vmem:[%s1358_s5 + $0x8] sm:$0xff] %v914_v52  }
 0x2b3   :  { %910 = vst [vmem:[%s1358_s5] sm:$0xff] %v909_v54  }
 0x2b5   :  { %v1094_v55 = vpop.f32.mrb[20].mxu0 }
 0x2b6   :  { %v634_v56 = vpop.f32.mrb[21].mxu0 }
 0x2b7   :  { %v1095_v57 = vpop.f32.mrb[22].mxu0 }
 0x2b8   :  { %v924_v58 = vpack.c.bf16 %v1095_v57, %v1094_v55  ;;  %v637_v59 = vpop.f32.mrb[23].mxu0 }
 0x2b9   :  { %v919_v60 = vpack.c.bf16 %v637_v59, %v634_v56 }
 0x2ba   :  { %955 = vst [vmem:[%s1358_s5 + $0x18] sm:$0xff] %v924_v58  }
 0x2bb   :  { %954 = vst [vmem:[%s1358_s5 + $0x10] sm:$0xff] %v919_v60  }
 0x2bd   :  { %v1098_v61 = vpop.f32.mrb[16].mxu1 }
 0x2be   :  { %v650_v62 = vpop.f32.mrb[17].mxu1 }
 0x2bf   :  { %v1099_v63 = vpop.f32.mrb[18].mxu1 }
 0x2c0   :  { %v934_v0 = vpack.c.bf16 %v1099_v63, %v1098_v61  ;;  %v653_v1 = vpop.f32.mrb[19].mxu1 }
 0x2c1   :  { %v929_v2 = vpack.c.bf16 %v653_v1, %v650_v62 }
 0x2c2   :  { %957 = vst [vmem:[%s1358_s5 + $0x28] sm:$0xff] %v934_v0  }
 0x2c3   :  { %956 = vst [vmem:[%s1358_s5 + $0x20] sm:$0xff] %v929_v2  }
 0x2c5   :  { %v1102_v3 = vpop.f32.mrb[20].mxu1 }
 0x2c6   :  { %v666_v4 = vpop.f32.mrb[21].mxu1 }
 0x2c7   :  { %v1103_v5 = vpop.f32.mrb[22].mxu1 }
 0x2c8   :  { %v944_v6 = vpack.c.bf16 %v1103_v5, %v1102_v3  ;;  %v669_v7 = vpop.f32.mrb[23].mxu1 }
 0x2c9   :  { %v939_v8 = vpack.c.bf16 %v669_v7, %v666_v4 }
 0x2ca   :  { %959 = vst [vmem:[%s1358_s5 + $0x38] sm:$0xff] %v944_v6  }
 0x2cb   :  { %958 = vst [vmem:[%s1358_s5 + $0x30] sm:$0xff] %v939_v8  }

</bundles_post_ra>
